<compile_context>
chip_gen: v7x
topology: tpu7x:2x2x1
jax: 0.10.0
libtpu: 0.0.40
codegen_flags: <defaults>
</compile_context>

<pallas_src>
import math

import jax
import jax.numpy as jnp
from jax.experimental import pallas as pl
from jax.experimental.pallas import tpu as pltpu


def _discriminator_kernel(x_ref, w1_ref, b1_ref, w2_ref, b2_ref,
                          w3_ref, b3_ref, o_ref):
    """Fused 3-layer MLP: (Linear + LeakyReLU(0.2)) x2 -> Linear -> Sigmoid."""
    # In-kernel f32 -> bf16 cast for the MXU (cheap VPU op, no extra HBM pass).
    x = x_ref[...].astype(jnp.bfloat16)                  # (TB, D)

    # ---- Layer 1: Linear(D, 512) + LeakyReLU(0.2) ----
    h1 = jnp.dot(x, w1_ref[...], preferred_element_type=jnp.float32)
    h1 = h1 + b1_ref[...]                                # f32 bias broadcast
    h1 = jnp.maximum(h1, 0.2 * h1)                       # LeakyReLU, 2 VPU ops

    # ---- Layer 2: Linear(512, 256) + LeakyReLU(0.2) ----
    h2 = jnp.dot(h1.astype(jnp.bfloat16), w2_ref[...],
                 preferred_element_type=jnp.float32)
    h2 = h2 + b2_ref[...]
    h2 = jnp.maximum(h2, 0.2 * h2)

    # ---- Layer 3: Linear(256, 1) as a lane reduction + Sigmoid ----
    # (TB,256)x(256,1) on the MXU would use 1 of 256 output lanes; the
    # broadcast-multiply + lane reduce runs on the otherwise-idle VPU/XLU.
    h3 = jnp.sum(h2 * w3_ref[...], axis=-1, keepdims=True) + b3_ref[0, 0]
    o_ref[...] = pl.reciprocal(1.0 + jnp.exp(-h3), approx=True)  # EUP sigmoid


def _round_up(x, m):
    return ((x + m - 1) // m) * m


def _preferred_batch_tile():
    """128 rows on v5e (4x128x128 MXU), 256 on v6e/v7x (2x256x256 MXU)."""
    try:
        kind = jax.devices()[0].device_kind.lower()
        if "v5 lite" in kind or "v5e" in kind or "v5lite" in kind:
            return 128
    except Exception:
        pass
    return 256


def discriminator_forward(img, params, batch_tile=None):
    """img: (N, C, H, W) float32. Returns validity (N, 1) float32.

    NOTE: for throughput, callers should batch enough rows per call
    (>=128 on v5e, >=256 on v6e/v7x) so a full MXU-height tile amortizes the
    resident-weight DMA and per-step overhead.
    """
    w1, b1, w2, b2, w3, b3 = params
    B = img.shape[0]
    D = math.prod(img.shape[1:])
    x = img.reshape(B, D)                                # torch .view(N, -1); f32

    # Batch tiling: pad B up to a tile multiple; padded rows are computed but
    # sliced off (row-wise MLP => no cross-row contamination).
    pref = batch_tile if batch_tile is not None else _preferred_batch_tile()
    TB = min(pref, _round_up(B, 8))

    # Keep double-buffered f32 x tiles + resident weights inside scoped VMEM
    # on every generation (v7x has only 64 MiB physical per TC).
    def _footprint(tb):
        return (2 * tb * D * 4 + 2 * tb * 4             # x / out double buffers
                + w1.size * w1.dtype.itemsize + w2.size * w2.dtype.itemsize
                + (b1.size + b2.size + w3.size + b3.size) * 4)
    while TB > 8 and _footprint(TB) > 48 * 1024 * 1024:
        TB //= 2

    B_pad = _round_up(B, TB)
    if B_pad != B:
        x = jnp.pad(x, ((0, B_pad - B), (0, 0)))
    grid = (B_pad // TB,)

    vmem_limit = None
    fp = _footprint(TB)
    if fp > 12 * 1024 * 1024:                            # raise only when needed
        vmem_limit = min(int(fp * 1.5), 64 * 1024 * 1024)

    # Advisory cost estimate for XLA scheduling when fused into a GAN step.
    flops = 2 * B_pad * (D * 512 + 512 * 256 + 256)
    transcendentals = 2 * B_pad                          # exp + approx recip
    bytes_accessed = (x.size * 4 + w1.size * 2 + w2.size * 2 + w3.size * 4 +
                      b1.size * 4 + b2.size * 4 + b3.size * 4 + B_pad * 4)

    const2d = lambda shape: pl.BlockSpec(shape, lambda i: (0, 0))

    out = pl.pallas_call(
        _discriminator_kernel,
        out_shape=jax.ShapeDtypeStruct((B_pad, 1), jnp.float32),
        grid=grid,
        in_specs=[
            pl.BlockSpec((TB, D), lambda i: (i, 0)),     # x: streamed per tile
            const2d(w1.shape), const2d(b1.shape),        # weights resident
            const2d(w2.shape), const2d(b2.shape),
            const2d(w3.shape),
            pl.BlockSpec(memory_space=pltpu.MemorySpace.SMEM),  # b3 scalar
        ],
        out_specs=pl.BlockSpec((TB, 1), lambda i: (i, 0)),
        compiler_params=pltpu.CompilerParams(
            dimension_semantics=("parallel",),           # 2 TCs on v7x
            vmem_limit_bytes=vmem_limit),
        cost_estimate=pl.CostEstimate(
            flops=flops, transcendentals=transcendentals,
            bytes_accessed=bytes_accessed),
    )(x, w1, b1, w2, b2, w3, b3)
    return out[:B]


def init_params(key, in_features):
    """Deterministic init matching nn.Linear's U(-1/sqrt(fan_in), 1/sqrt(fan_in)).

    Storage layout (kernel-friendly):
      w1 (D, 512) bf16, b1 (1, 512) f32
      w2 (512, 256) bf16, b2 (1, 256) f32
      w3 (1, 256)  f32 (row vector for the lane reduce), b3 (1, 1) f32
    """
    dims = [(in_features, 512), (512, 256), (256, 1)]
    raw = []
    for (fan_in, fan_out) in dims:
        key, kw, kb = jax.random.split(key, 3)
        bound = 1.0 / math.sqrt(fan_in)
        w = jax.random.uniform(kw, (fan_in, fan_out), jnp.float32, -bound, bound)
        b = jax.random.uniform(kb, (1, fan_out), jnp.float32, -bound, bound)
        raw += [w, b]
    w1, b1, w2, b2, w3, b3 = raw
    return (w1.astype(jnp.bfloat16), b1,
            w2.astype(jnp.bfloat16), b2,
            w3.reshape(1, 256), b3.reshape(1, 1))


def _reference_forward(img, params):
    """Pure-JAX reference with identical dtypes (for correctness checking)."""
    w1, b1, w2, b2, w3, b3 = params
    B = img.shape[0]
    x = img.reshape(B, -1).astype(jnp.bfloat16)
    h1 = jnp.dot(x, w1, preferred_element_type=jnp.float32) + b1
    h1 = jnp.where(h1 >= 0, h1, 0.2 * h1)
    h2 = jnp.dot(h1.astype(jnp.bfloat16), w2,
                 preferred_element_type=jnp.float32) + b2
    h2 = jnp.where(h2 >= 0, h2, 0.2 * h2)
    h3 = jnp.sum(h2 * w3, axis=-1, keepdims=True) + b3[0, 0]
    return jax.nn.sigmoid(h3)


if __name__ == "__main__":
    # Small, module-consistent shapes: batch=2, channels=1, img_size=16.
    B, C, IMG = 2, 1, 16
    key = jax.random.PRNGKey(0)
    k_img, k_par = jax.random.split(key)

    img = jax.random.normal(k_img, (B, C, IMG, IMG), jnp.float32)
    params = init_params(k_par, IMG * IMG * C)

    validity = discriminator_forward(img, params)
    jax.block_until_ready(validity)

    # Sanity: shape (B, 1), sigmoid range, and agreement with a pure-JAX ref
    # (bf16 weights + approx reciprocal => small tolerance).
    ref = _reference_forward(img, params)
    assert validity.shape == (B, 1)
    assert bool(jnp.all(jnp.isfinite(validity)))
    assert bool(jnp.all((validity >= 0.0) & (validity <= 1.0 + 1e-3)))
    assert bool(jnp.allclose(validity, ref, atol=5e-3, rtol=1e-2))

    print("KERNEL_OK")
</pallas_src>

<mosaic_0001>
module attributes {stable_mosaic.version = 11 : i64} {
  func.func @_discriminator_kernel(%arg0: i32, %arg1: memref<8x256xf32, #tpu.memory_space<vmem>>, %arg2: memref<256x512xbf16, #tpu.memory_space<vmem>>, %arg3: memref<1x512xf32, #tpu.memory_space<vmem>>, %arg4: memref<512x256xbf16, #tpu.memory_space<vmem>>, %arg5: memref<1x256xf32, #tpu.memory_space<vmem>>, %arg6: memref<1x256xf32, #tpu.memory_space<vmem>>, %arg7: memref<1x1xf32, #tpu.memory_space<smem>>, %arg8: memref<8x1xf32, #tpu.memory_space<vmem>>) attributes {dimension_semantics = [#tpu.dimension_semantics<parallel>], iteration_bounds = array<i64: 1>, scalar_prefetch = 0 : i64, scratch_operands = 0 : i64, tpu.core_type = #tpu.core_type<tc>, window_params = [{transform_indices = @transform_0, window_bounds = array<i64: 8, 256>}, {pipeline_mode = #tpu.pipeline_mode<synchronous>, transform_indices = @transform_1, window_bounds = array<i64: 256, 512>}, {pipeline_mode = #tpu.pipeline_mode<synchronous>, transform_indices = @transform_2, window_bounds = array<i64: 1, 512>}, {pipeline_mode = #tpu.pipeline_mode<synchronous>, transform_indices = @transform_3, window_bounds = array<i64: 512, 256>}, {pipeline_mode = #tpu.pipeline_mode<synchronous>, transform_indices = @transform_4, window_bounds = array<i64: 1, 256>}, {pipeline_mode = #tpu.pipeline_mode<synchronous>, transform_indices = @transform_5, window_bounds = array<i64: 1, 256>}, {transform_indices = @transform_6, window_bounds = array<i64: 1, 1>}, {transform_indices = @transform_7, window_bounds = array<i64: 8, 1>}]} {
    %c0 = arith.constant 0 : index
    %c0_0 = arith.constant 0 : index
    %0 = vector.load %arg1[%c0, %c0_0] : memref<8x256xf32, #tpu.memory_space<vmem>>, vector<8x256xf32>
    %1 = arith.truncf %0 : vector<8x256xf32> to vector<8x256xbf16>
    %c0_1 = arith.constant 0 : index
    %c0_2 = arith.constant 0 : index
    %2 = vector.load %arg2[%c0_1, %c0_2] : memref<256x512xbf16, #tpu.memory_space<vmem>>, vector<256x512xbf16>
    %cst = arith.constant dense<0.000000e+00> : vector<8x512xf32>
    %3 = tpu.matmul %1, %2, %cst {dimension_numbers = #tpu.dot_dimension_numbers<[1], [0], [0], [1], [0, 0, 1, 1], [], []>} : vector<8x256xbf16>, vector<256x512xbf16>, vector<8x512xf32> -> vector<8x512xf32>
    %c0_3 = arith.constant 0 : index
    %c0_4 = arith.constant 0 : index
    %4 = vector.load %arg3[%c0_3, %c0_4] : memref<1x512xf32, #tpu.memory_space<vmem>>, vector<1x512xf32>
    %5 = vector.broadcast %4 : vector<1x512xf32> to vector<8x512xf32>
    %6 = arith.addf %3, %5 : vector<8x512xf32>
    %cst_5 = arith.constant 2.000000e-01 : f32
    %7 = vector.broadcast %cst_5 : f32 to vector<8x512xf32>
    %8 = arith.mulf %7, %6 : vector<8x512xf32>
    %9 = arith.maximumf %6, %8 : vector<8x512xf32>
    %10 = arith.truncf %9 : vector<8x512xf32> to vector<8x512xbf16>
    %c0_6 = arith.constant 0 : index
    %c0_7 = arith.constant 0 : index
    %11 = vector.load %arg4[%c0_6, %c0_7] : memref<512x256xbf16, #tpu.memory_space<vmem>>, vector<512x256xbf16>
    %cst_8 = arith.constant dense<0.000000e+00> : vector<8x256xf32>
    %12 = tpu.matmul %10, %11, %cst_8 {dimension_numbers = #tpu.dot_dimension_numbers<[1], [0], [0], [1], [0, 0, 1, 1], [], []>} : vector<8x512xbf16>, vector<512x256xbf16>, vector<8x256xf32> -> vector<8x256xf32>
    %c0_9 = arith.constant 0 : index
    %c0_10 = arith.constant 0 : index
    %13 = vector.load %arg5[%c0_9, %c0_10] : memref<1x256xf32, #tpu.memory_space<vmem>>, vector<1x256xf32>
    %14 = vector.broadcast %13 : vector<1x256xf32> to vector<8x256xf32>
    %15 = arith.addf %12, %14 : vector<8x256xf32>
    %cst_11 = arith.constant 2.000000e-01 : f32
    %16 = vector.broadcast %cst_11 : f32 to vector<8x256xf32>
    %17 = arith.mulf %16, %15 : vector<8x256xf32>
    %18 = arith.maximumf %15, %17 : vector<8x256xf32>
    %c0_12 = arith.constant 0 : index
    %c0_13 = arith.constant 0 : index
    %19 = vector.load %arg6[%c0_12, %c0_13] : memref<1x256xf32, #tpu.memory_space<vmem>>, vector<1x256xf32>
    %20 = vector.broadcast %19 : vector<1x256xf32> to vector<8x256xf32>
    %21 = arith.mulf %18, %20 : vector<8x256xf32>
    %cst_14 = arith.constant dense<0.000000e+00> : vector<8xf32>
    %22 = vector.multi_reduction <add>, %21, %cst_14 [1] : vector<8x256xf32> to vector<8xf32>
    %23 = vector.shape_cast %22 : vector<8xf32> to vector<8x1xf32>
    %c0_15 = arith.constant 0 : index
    %c0_16 = arith.constant 0 : index
    %24 = memref.load %arg7[%c0_15, %c0_16] : memref<1x1xf32, #tpu.memory_space<smem>>
    %25 = vector.broadcast %24 : f32 to vector<8x1xf32>
    %26 = arith.addf %23, %25 : vector<8x1xf32>
    %cst_17 = arith.constant 0.000000e+00 : f32
    %27 = vector.broadcast %cst_17 : f32 to vector<8x1xf32>
    %28 = arith.subf %27, %26 : vector<8x1xf32>
    %29 = math.exp %28 : vector<8x1xf32>
    %cst_18 = arith.constant 1.000000e+00 : f32
    %30 = vector.broadcast %cst_18 : f32 to vector<8x1xf32>
    %31 = arith.addf %30, %29 : vector<8x1xf32>
    %32 = tpu.reciprocal %31 {approx = true} : vector<8x1xf32> -> vector<8x1xf32>
    %c0_19 = arith.constant 0 : index
    %c0_20 = arith.constant 0 : index
    %33 = vector.load %arg8[%c0_19, %c0_20] : memref<8x1xf32, #tpu.memory_space<vmem>>, vector<8x1xf32>
    tpu.vector_store %arg8[%c0_19, %c0_20], %32 {strides = array<i32>} : memref<8x1xf32, #tpu.memory_space<vmem>>, vector<8x1xf32>,
    return
  }
  func.func @transform_0(%arg0: i32) -> (i32, i32) {
    %c0_i32 = arith.constant 0 : i32
    %c0_i32_0 = arith.constant 0 : i32
    return %arg0, %c0_i32 : i32, i32
  }
  func.func @transform_1(%arg0: i32) -> (i32, i32) {
    %c0_i32 = arith.constant 0 : i32
    %c0_i32_0 = arith.constant 0 : i32
    %c0_i32_1 = arith.constant 0 : i32
    return %c0_i32, %c0_i32_0 : i32, i32
  }
  func.func @transform_2(%arg0: i32) -> (i32, i32) {
    %c0_i32 = arith.constant 0 : i32
    %c0_i32_0 = arith.constant 0 : i32
    %c0_i32_1 = arith.constant 0 : i32
    return %c0_i32, %c0_i32_0 : i32, i32
  }
  func.func @transform_3(%arg0: i32) -> (i32, i32) {
    %c0_i32 = arith.constant 0 : i32
    %c0_i32_0 = arith.constant 0 : i32
    %c0_i32_1 = arith.constant 0 : i32
    return %c0_i32, %c0_i32_0 : i32, i32
  }
  func.func @transform_4(%arg0: i32) -> (i32, i32) {
    %c0_i32 = arith.constant 0 : i32
    %c0_i32_0 = arith.constant 0 : i32
    %c0_i32_1 = arith.constant 0 : i32
    return %c0_i32, %c0_i32_0 : i32, i32
  }
  func.func @transform_5(%arg0: i32) -> (i32, i32) {
    %c0_i32 = arith.constant 0 : i32
    %c0_i32_0 = arith.constant 0 : i32
    %c0_i32_1 = arith.constant 0 : i32
    return %c0_i32, %c0_i32_0 : i32, i32
  }
  func.func @transform_6(%arg0: i32) -> (i32, i32) {
    %c0_i32 = arith.constant 0 : i32
    %c0_i32_0 = arith.constant 0 : i32
    %c0_i32_1 = arith.constant 0 : i32
    return %c0_i32, %c0_i32_0 : i32, i32
  }
  func.func @transform_7(%arg0: i32) -> (i32, i32) {
    %c0_i32 = arith.constant 0 : i32
    %c0_i32_0 = arith.constant 0 : i32
    return %arg0, %c0_i32 : i32, i32
  }
}

</mosaic_0001>

<bundles_post_ra>
// kernel: tpu_custom_call.1
= control target key start
LH: loop header
LB: loop body
LE: loop exit
PB: predicated region body
PF: predicated region fallthrough
CT: control target
= control target key end

     0   :  { %13 = vsyncpa [#allocation4], 0  ;;  %s1620_s0 = inlined_call_operand.hbm [shape: f32[8,256], index: 0, kind: input, shape index: {}]   ;;  %s1621_s1 = inlined_call_operand.hbm [shape: bf16[256,512], index: 1, kind: input, shape index: {}]   ;;  %s1622_s2 = inlined_call_operand.vmem [shape: f32[1,512], index: 2, kind: input, shape index: {}]   ;;  %s1623_s3 = inlined_call_operand.hbm [shape: bf16[512,256], index: 3, kind: input, shape index: {}]   ;;  %s1624_s4 = inlined_call_operand.vmem [shape: f32[1,256], index: 4, kind: input, shape index: {}]   ;;  %s1625_s5 = inlined_call_operand.vmem [shape: f32[1,256], index: 5, kind: input, shape index: {}]   ;;  %s1626_s6 = inlined_call_operand.<no memory space> [shape: f32[1,1], index: 6, kind: input, shape index: {}]   ;;  %s1627_s7 = inlined_call_operand.vmem [shape: f32[8,1], index: 7, kind: output, shape index: {}]  }
   0x1   :  { %14 = vsyncpa [#allocation6], 0  ;;  %s1492_s24 = smov [#allocation5]   ;;  %s1422_s28 = scalar_lea.hbm %s1621_s1, 8192 }
   0x2   :  { %s30_s25 = sshll.u32 %s1492_s24, 4  ;;  %p1423_p0 = scmp.ne.s32.totalorder %s1621_s1, %s1422_s28  ;;  %s31_s25 = int_to_ptr.vmem [resolvable:$true] %s30_s25 }
   0x3   :  { %p1426_p1 = scmp.lt.u32.totalorder %s1422_s28, %s1621_s1 }
   0x5   :  { %p1428_p2 = pnand %p1426_p1, %p1423_p0 }
   0x7   :  { %1431 = shalt.err (!%p1428_p2)
}
   0x8   :  { %s1432_s10 = scalar_lea.vmem %s31_s25, 8192  ;;  %p1437_p4 = scmp.lt.s32.totalorder %s31_s25, %s31_s25 }
   0x9   :  { %p1433_p3 = scmp.ne.s32.totalorder %s31_s25, %s1432_s10  ;;  %p1438_p5 = scmp.lt.s32.totalorder %s1432_s10, %s1432_s10 }
   0xb   :  { %p1439_p6 = por %p1438_p5, %p1437_p4 }
   0xd   :  { %p1440_p7 = pnand %p1439_p6, %p1433_p3 }
   0xf   :  { %1443 = shalt.err (!%p1440_p7)
}
  0x10   :  { %s1493_s11 = smov 256   ;;  %s1494_s12 = smov 16  }
  0x11   :  { %36 = dma.hbm_to_vmem [thread:$0]  %s1621_s1, 8192, %s31_s25, [#allocation6], %s1493_s11, %s1493_s11, %s1494_s12  }
  0x12   :  { %s1495_s15 = smov [#allocation3]   ;;  %s1496_s17 = smov [#allocation7]  }
  0x13   :  { %s21_s16 = sshll.u32 %s1495_s15, 4  ;;  %s44_s18 = sshll.u32 %s1496_s17, 4  ;;  %s22_s16 = int_to_ptr.vmem [resolvable:$true] %s21_s16  ;;  %s45_s18 = int_to_ptr.vmem [resolvable:$true] %s44_s18 }
  0x14   :  { %s1444_s21 = scalar_lea.hbm %s1620_s0, 256 }
  0x15   :  { %p1445_p8 = scmp.ne.s32.totalorder %s1620_s0, %s1444_s21  ;;  %p1448_p9 = scmp.lt.u32.totalorder %s1444_s21, %s1620_s0 }
  0x17   :  { %p1450_p10 = pnand %p1448_p9, %p1445_p8 }
  0x19   :  { %1453 = shalt.err (!%p1450_p10)
}
  0x1a   :  { %s1454_s1 = scalar_lea.vmem %s22_s16, 256  ;;  %p1459_p12 = scmp.lt.s32.totalorder %s22_s16, %s22_s16 }
  0x1b   :  { %p1455_p11 = scmp.ne.s32.totalorder %s22_s16, %s1454_s1  ;;  %p1460_p13 = scmp.lt.s32.totalorder %s1454_s1, %s1454_s1 }
  0x1d   :  { %p1461_p0 = por %p1460_p13, %p1459_p12 }
  0x1f   :  { %p1462_p1 = pnand %p1461_p0, %p1455_p11 }
  0x21   :  { %1465 = shalt.err (!%p1462_p1)
}
  0x22   :  { %24 = dma.hbm_to_vmem [thread:$0]  %s1620_s0, 256, %s22_s16, [#allocation4]  }
  0x23   :  { %s1466_s30 = scalar_lea.hbm %s1623_s3, 8192 }
  0x24   :  { %p1467_p2 = scmp.ne.s32.totalorder %s1623_s3, %s1466_s30  ;;  %p1470_p3 = scmp.lt.u32.totalorder %s1466_s30, %s1623_s3 }
  0x26   :  { %p1472_p4 = pnand %p1470_p3, %p1467_p2 }
  0x28   :  { %1475 = shalt.err (!%p1472_p4)
}
  0x29   :  { %s1476_s12 = scalar_lea.vmem %s45_s18, 8192  ;;  %p1481_p6 = scmp.lt.s32.totalorder %s45_s18, %s45_s18 }
  0x2a   :  { %p1477_p5 = scmp.ne.s32.totalorder %s45_s18, %s1476_s12  ;;  %p1482_p7 = scmp.lt.s32.totalorder %s1476_s12, %s1476_s12 }
  0x2c   :  { %p1483_p8 = por %p1482_p7, %p1481_p6 }
  0x2e   :  { %p1484_p9 = pnand %p1483_p8, %p1477_p5 }
  0x30   :  { %1487 = shalt.err (!%p1484_p9)
}
  0x31   :  { %s1497_s0 = smov 128   ;;  %s1498_s13 = smov 8  }
  0x32   :  { %50 = dma.hbm_to_vmem [thread:$0]  %s1623_s3, 8192, %s45_s18, [#allocation6], %s1497_s0, %s1497_s0, %s1498_s13  }
  0x33   :  { %1488 = dma.done.wait [#allocation4], 256  }
  0x34   :  { %1489 = vsyncadd [#allocation4], 4294967040 }
  0x35   :  { %1490 = dma.done.wait [#allocation6], 16384  }
  0x36   :  { %1491 = vsyncadd [#allocation6], 4294950912  ;;  %v1226_v0 = vld [vmem:[#allocation5 + $0x4] ss:$16 sps:$4 sm:$0xff]   ;;  %v1228_v1 = vld [vmem:[#allocation5] ss:$16 sps:$4 sm:$0xff]  }
  0x37   :  { %476 = vmatprep.subr.bf16.mxu1 %v1226_v0  ;;  %v1229_v2 = vld [vmem:[#allocation5 + $0x24] ss:$16 sps:$4 sm:$0xff]   ;;  %v1231_v3 = vld [vmem:[#allocation5 + $0x20] ss:$16 sps:$4 sm:$0xff]   ;;  %v67_v13 = vld [vmem:[#allocation3 + $0x8] sm:$0xff]  ;;  %vm1077_vm0 = vcmask 7168  }
  0x38   :  { %477 = vmatpush1.bf16.msra.mxu1 %v1228_v1  ;;  %v1232_v4 = vld [vmem:[#allocation5 + $0x44] ss:$16 sps:$4 sm:$0xff]   ;;  %v1234_v5 = vld [vmem:[#allocation5 + $0x40] ss:$16 sps:$4 sm:$0xff]   ;;  %v1575_v14 = vpack.c.bf16 %v67_v13, %v67_v13  ;;  %v1276_v45 = vld [vmem:[#allocation5 + $0xc] ss:$16 sps:$4 sm:$0xff]  }
  0x39   :  { %478 = vmatprep.subr.bf16.mxu1 %v1229_v2  ;;  %v1235_v6 = vld [vmem:[#allocation5 + $0x64] ss:$16 sps:$4 sm:$0xff]   ;;  %v1237_v7 = vld [vmem:[#allocation5 + $0x60] ss:$16 sps:$4 sm:$0xff]   ;;  %v1274_v47 = vld [vmem:[#allocation5 + $0x8] ss:$16 sps:$4 sm:$0xff]  }
  0x3a   :  { %v1238_v8 = vld [vmem:[#allocation5 + $0x84] ss:$16 sps:$4 sm:$0xff]   ;;  %v1240_v9 = vld [vmem:[#allocation5 + $0x80] ss:$16 sps:$4 sm:$0xff]   ;;  %508 = vmatprep.mubr.bf16.mxu1 %v1575_v14  ;;  %v1279_v49 = vld [vmem:[#allocation5 + $0x2c] ss:$16 sps:$4 sm:$0xff]  }
  0x3b   :  { %v1241_v10 = vld [vmem:[#allocation5 + $0xa4] ss:$16 sps:$4 sm:$0xff]   ;;  %v1243_v11 = vld [vmem:[#allocation5 + $0xa0] ss:$16 sps:$4 sm:$0xff]   ;;  %v1277_v52 = vld [vmem:[#allocation5 + $0x28] ss:$16 sps:$4 sm:$0xff]  }
  0x3c   :  { %479 = vmatpush1.bf16.msra.mxu1 %v1231_v3  ;;  %v1244_v12 = vld [vmem:[#allocation5 + $0xc4] ss:$16 sps:$4 sm:$0xff]   ;;  %v1246_v15 = vld [vmem:[#allocation5 + $0xc0] ss:$16 sps:$4 sm:$0xff]   ;;  %v1282_v53 = vld [vmem:[#allocation5 + $0x4c] ss:$16 sps:$4 sm:$0xff]  }
  0x3d   :  { %480 = vmatprep.subr.bf16.mxu1 %v1232_v4  ;;  %v1247_v16 = vld [vmem:[#allocation5 + $0xe4] ss:$16 sps:$4 sm:$0xff]   ;;  %v1249_v17 = vld [vmem:[#allocation5 + $0xe0] ss:$16 sps:$4 sm:$0xff]   ;;  %v1280_v56 = vld [vmem:[#allocation5 + $0x48] ss:$16 sps:$4 sm:$0xff]  }
  0x3e   :  { %v1250_v18 = vld [vmem:[#allocation5 + $0x104] ss:$16 sps:$4 sm:$0xff]   ;;  %v1252_v19 = vld [vmem:[#allocation5 + $0x100] ss:$16 sps:$4 sm:$0xff]   ;;  %v1285_v57 = vld [vmem:[#allocation5 + $0x6c] ss:$16 sps:$4 sm:$0xff]  }
  0x3f   :  { %v1253_v20 = vld [vmem:[#allocation5 + $0x124] ss:$16 sps:$4 sm:$0xff]   ;;  %v1255_v21 = vld [vmem:[#allocation5 + $0x120] ss:$16 sps:$4 sm:$0xff]   ;;  %v1283_v60 = vld [vmem:[#allocation5 + $0x68] ss:$16 sps:$4 sm:$0xff]  }
  0x40   :  { %481 = vmatpush1.bf16.msra.mxu1 %v1234_v5  ;;  %v1256_v22 = vld [vmem:[#allocation5 + $0x144] ss:$16 sps:$4 sm:$0xff]   ;;  %v1258_v23 = vld [vmem:[#allocation5 + $0x140] ss:$16 sps:$4 sm:$0xff]   ;;  %v1288_v61 = vld [vmem:[#allocation5 + $0x8c] ss:$16 sps:$4 sm:$0xff]  }
  0x41   :  { %482 = vmatprep.subr.bf16.mxu1 %v1235_v6  ;;  %v1259_v24 = vld [vmem:[#allocation5 + $0x164] ss:$16 sps:$4 sm:$0xff]   ;;  %v1261_v25 = vld [vmem:[#allocation5 + $0x160] ss:$16 sps:$4 sm:$0xff]   ;;  %v1286_v0 = vld [vmem:[#allocation5 + $0x88] ss:$16 sps:$4 sm:$0xff]  }
  0x42   :  { %v1262_v26 = vld [vmem:[#allocation5 + $0x184] ss:$16 sps:$4 sm:$0xff]   ;;  %v1324_v28 = vld [vmem:[#allocation7] ss:$8 sps:$4 sm:$0xff]   ;;  %v1327_v31 = vld [vmem:[#allocation7 + $0x10] ss:$8 sps:$4 sm:$0xff]  }
  0x43   :  { %v1322_v27 = vld [vmem:[#allocation7 + $0x4] ss:$8 sps:$4 sm:$0xff]   ;;  %v1325_v29 = vld [vmem:[#allocation7 + $0x14] ss:$8 sps:$4 sm:$0xff]   ;;  %v1264_v30 = vld [vmem:[#allocation5 + $0x180] ss:$16 sps:$4 sm:$0xff]  }
  0x44   :  { %483 = vmatpush1.bf16.msra.mxu1 %v1237_v7  ;;  %966 = vmatprep.subr.bf16.mxu0 %v1322_v27  ;;  %v1265_v32 = vld [vmem:[#allocation5 + $0x1a4] ss:$16 sps:$4 sm:$0xff]   ;;  %v1267_v34 = vld [vmem:[#allocation5 + $0x1a0] ss:$16 sps:$4 sm:$0xff]   ;;  %v1291_v1 = vld [vmem:[#allocation5 + $0xac] ss:$16 sps:$4 sm:$0xff]  }
  0x45   :  { %484 = vmatprep.subr.bf16.mxu1 %v1238_v8  ;;  %967 = vmatpush1.bf16.msra.mxu0 %v1324_v28  ;;  %v1328_v33 = vld [vmem:[#allocation7 + $0x24] ss:$8 sps:$4 sm:$0xff]   ;;  %v1330_v35 = vld [vmem:[#allocation7 + $0x20] ss:$8 sps:$4 sm:$0xff]   ;;  %v1331_v37 = vld [vmem:[#allocation7 + $0x34] ss:$8 sps:$4 sm:$0xff]  }
  0x46   :  { %968 = vmatprep.subr.bf16.mxu0 %v1325_v29  ;;  %v1268_v36 = vld [vmem:[#allocation5 + $0x1c4] ss:$16 sps:$4 sm:$0xff]   ;;  %v1270_v38 = vld [vmem:[#allocation5 + $0x1c0] ss:$16 sps:$4 sm:$0xff]   ;;  %v1289_v4 = vld [vmem:[#allocation5 + $0xa8] ss:$16 sps:$4 sm:$0xff]  }
  0x47   :  { %v1333_v39 = vld [vmem:[#allocation7 + $0x30] ss:$8 sps:$4 sm:$0xff]   ;;  %v1271_v40 = vld [vmem:[#allocation5 + $0x1e4] ss:$16 sps:$4 sm:$0xff]   ;;  %v1336_v44 = vld [vmem:[#allocation7 + $0x40] ss:$8 sps:$4 sm:$0xff]  }
  0x48   :  { %485 = vmatpush1.bf16.msra.mxu1 %v1240_v9  ;;  %v1334_v41 = vld [vmem:[#allocation7 + $0x44] ss:$8 sps:$4 sm:$0xff]   ;;  %v1273_v42 = vld [vmem:[#allocation5 + $0x1e0] ss:$16 sps:$4 sm:$0xff]   ;;  %v1337_v46 = vld [vmem:[#allocation7 + $0x54] ss:$8 sps:$4 sm:$0xff]  }
  0x49   :  { %486 = vmatprep.subr.bf16.mxu1 %v1241_v10  ;;  %969 = vmatpush1.bf16.msra.mxu0 %v1327_v31  ;;  %v66_v43 = vld [vmem:[#allocation3] sm:$0xff]  ;;  %v1340_v51 = vld [vmem:[#allocation7 + $0x64] ss:$8 sps:$4 sm:$0xff]   ;;  %v1342_v54 = vld [vmem:[#allocation7 + $0x60] ss:$8 sps:$4 sm:$0xff]  }
  0x4a   :  { %970 = vmatprep.subr.bf16.mxu0 %v1328_v33  ;;  %v1578_v48 = vpack.c.bf16 %v66_v43, %v66_v43  ;;  %v1339_v50 = vld [vmem:[#allocation7 + $0x50] ss:$8 sps:$4 sm:$0xff]   ;;  %v1343_v55 = vld [vmem:[#allocation7 + $0x74] ss:$8 sps:$4 sm:$0xff]   ;;  %v1346_v59 = vld [vmem:[#allocation7 + $0x84] ss:$8 sps:$4 sm:$0xff]  }
  0x4b   :  { %v1345_v58 = vld [vmem:[#allocation7 + $0x70] ss:$8 sps:$4 sm:$0xff]   ;;  %v1348_v62 = vld [vmem:[#allocation7 + $0x80] ss:$8 sps:$4 sm:$0xff]   ;;  %v1349_v63 = vld [vmem:[#allocation7 + $0x94] ss:$8 sps:$4 sm:$0xff]  }
  0x4c   :  { %487 = vmatpush1.bf16.msra.mxu1 %v1243_v11  ;;  %v1351_v2 = vld [vmem:[#allocation7 + $0x90] ss:$8 sps:$4 sm:$0xff]   ;;  %v1352_v3 = vld [vmem:[#allocation7 + $0xa4] ss:$8 sps:$4 sm:$0xff]   ;;  %v1354_v6 = vld [vmem:[#allocation7 + $0xa0] ss:$8 sps:$4 sm:$0xff]  }
  0x4d   :  { %488 = vmatprep.subr.bf16.mxu1 %v1244_v12  ;;  %971 = vmatpush1.bf16.msra.mxu0 %v1330_v35  ;;  %v1294_v5 = vld [vmem:[#allocation5 + $0xcc] ss:$16 sps:$4 sm:$0xff]   ;;  %v1292_v8 = vld [vmem:[#allocation5 + $0xc8] ss:$16 sps:$4 sm:$0xff]  }
  0x4e   :  { %972 = vmatprep.subr.bf16.mxu0 %v1331_v37  ;;  %v1355_v7 = vld [vmem:[#allocation7 + $0xb4] ss:$8 sps:$4 sm:$0xff]   ;;  %v1357_v10 = vld [vmem:[#allocation7 + $0xb0] ss:$8 sps:$4 sm:$0xff]   ;;  %v1358_v11 = vld [vmem:[#allocation7 + $0xc4] ss:$8 sps:$4 sm:$0xff]   ;;  %v136_v37 = vlaneseq }
  0x4f   :  { %v1297_v9 = vld [vmem:[#allocation5 + $0xec] ss:$16 sps:$4 sm:$0xff]   ;;  %v1295_v12 = vld [vmem:[#allocation5 + $0xe8] ss:$16 sps:$4 sm:$0xff]  }
  0x50   :  { %489 = vmatpush1.bf16.msra.mxu1 %v1246_v15  ;;  %v1300_v13 = vld [vmem:[#allocation5 + $0x10c] ss:$16 sps:$4 sm:$0xff]   ;;  %v1316_v28 = vld [vmem:[#allocation5 + $0x1c8] ss:$16 sps:$4 sm:$0xff]  }
  0x51   :  { %490 = vmatprep.subr.bf16.mxu1 %v1247_v16  ;;  %973 = vmatpush1.bf16.msra.mxu0 %v1333_v39  ;;  %v1361_v15 = vld [vmem:[#allocation7 + $0xd4] ss:$8 sps:$4 sm:$0xff]   ;;  %v1298_v16 = vld [vmem:[#allocation5 + $0x108] ss:$16 sps:$4 sm:$0xff]  }
  0x52   :  { %974 = vmatprep.subr.bf16.mxu0 %v1334_v41  ;;  %v1318_v27 = vld [vmem:[#allocation5 + $0x1cc] ss:$16 sps:$4 sm:$0xff]   ;;  %v1363_v31 = vld [vmem:[#allocation7 + $0xd0] ss:$8 sps:$4 sm:$0xff]   ;;  %v1366_v33 = vld [vmem:[#allocation7 + $0xe0] ss:$8 sps:$4 sm:$0xff]  }
  0x53   :  { %v1321_v29 = vld [vmem:[#allocation5 + $0x1ec] ss:$16 sps:$4 sm:$0xff]   ;;  %v1369_v35 = vld [vmem:[#allocation7 + $0xf0] ss:$8 sps:$4 sm:$0xff]  }
  0x54   :  { %491 = vmatpush1.bf16.msra.mxu1 %v1249_v17  ;;  %v1303_v17 = vld [vmem:[#allocation5 + $0x12c] ss:$16 sps:$4 sm:$0xff]  }
  0x55   :  { %492 = vmatprep.subr.bf16.mxu1 %v1250_v18  ;;  %975 = vmatpush1.bf16.msra.mxu0 %v1336_v44  ;;  %v1301_v18 = vld [vmem:[#allocation5 + $0x128] ss:$16 sps:$4 sm:$0xff]  }
  0x56   :  { %976 = vmatprep.subr.bf16.mxu0 %v1337_v46 }
  0x58   :  { %493 = vmatpush1.bf16.msra.mxu1 %v1252_v19  ;;  %v1306_v19 = vld [vmem:[#allocation5 + $0x14c] ss:$16 sps:$4 sm:$0xff]  }
  0x59   :  { %494 = vmatprep.subr.bf16.mxu1 %v1253_v20  ;;  %977 = vmatpush1.bf16.msra.mxu0 %v1339_v50  ;;  %v1304_v20 = vld [vmem:[#allocation5 + $0x148] ss:$16 sps:$4 sm:$0xff]  }
  0x5a   :  { %978 = vmatprep.subr.bf16.mxu0 %v1340_v51 }
  0x5c   :  { %495 = vmatpush1.bf16.msra.mxu1 %v1255_v21  ;;  %v1309_v21 = vld [vmem:[#allocation5 + $0x16c] ss:$16 sps:$4 sm:$0xff]  }
  0x5d   :  { %496 = vmatprep.subr.bf16.mxu1 %v1256_v22  ;;  %979 = vmatpush1.bf16.msra.mxu0 %v1342_v54  ;;  %v1307_v22 = vld [vmem:[#allocation5 + $0x168] ss:$16 sps:$4 sm:$0xff]  }
  0x5e   :  { %980 = vmatprep.subr.bf16.mxu0 %v1343_v55  ;;  %v1370_v55 = vld [vmem:[#allocation7 + $0x100] ss:$8 sps:$4 sm:$0xff]  }
  0x60   :  { %497 = vmatpush1.bf16.msra.mxu1 %v1258_v23  ;;  %v1312_v23 = vld [vmem:[#allocation5 + $0x18c] ss:$16 sps:$4 sm:$0xff]  }
  0x61   :  { %498 = vmatprep.subr.bf16.mxu1 %v1259_v24  ;;  %981 = vmatpush1.bf16.msra.mxu0 %v1345_v58  ;;  %v1310_v24 = vld [vmem:[#allocation5 + $0x188] ss:$16 sps:$4 sm:$0xff]  }
  0x62   :  { %982 = vmatprep.subr.bf16.mxu0 %v1346_v59  ;;  %v1373_v58 = vld [vmem:[#allocation7 + $0x110] ss:$8 sps:$4 sm:$0xff]   ;;  %v1378_v59 = vld [vmem:[#allocation7 + $0x124] ss:$8 sps:$4 sm:$0xff]  }
  0x64   :  { %499 = vmatpush1.bf16.msra.mxu1 %v1261_v25  ;;  %v1315_v25 = vld [vmem:[#allocation5 + $0x1ac] ss:$16 sps:$4 sm:$0xff]  }
  0x65   :  { %500 = vmatprep.subr.bf16.mxu1 %v1262_v26  ;;  %983 = vmatpush1.bf16.msra.mxu0 %v1348_v62  ;;  %v1313_v26 = vld [vmem:[#allocation5 + $0x1a8] ss:$16 sps:$4 sm:$0xff]  }
  0x66   :  { %984 = vmatprep.subr.bf16.mxu0 %v1349_v63  ;;  %v1379_v62 = vld [vmem:[#allocation7 + $0x130] ss:$8 sps:$4 sm:$0xff]   ;;  %v1384_v63 = vld [vmem:[#allocation7 + $0x144] ss:$8 sps:$4 sm:$0xff]  }
  0x68   :  { %501 = vmatpush1.bf16.msra.mxu1 %v1264_v30  ;;  %v1319_v30 = vld [vmem:[#allocation5 + $0x1e8] ss:$16 sps:$4 sm:$0xff]  }
  0x69   :  { %502 = vmatprep.subr.bf16.mxu1 %v1265_v32  ;;  %985 = vmatpush1.bf16.msra.mxu0 %v1351_v2  ;;  %v1364_v32 = vld [vmem:[#allocation7 + $0xe4] ss:$8 sps:$4 sm:$0xff]   ;;  %v1385_v2 = vld [vmem:[#allocation7 + $0x150] ss:$8 sps:$4 sm:$0xff]  }
  0x6a   :  { %986 = vmatprep.subr.bf16.mxu0 %v1352_v3  ;;  %v1390_v3 = vld [vmem:[#allocation7 + $0x164] ss:$8 sps:$4 sm:$0xff]  }
  0x6c   :  { %503 = vmatpush1.bf16.msra.mxu1 %v1267_v34  ;;  %v1367_v34 = vld [vmem:[#allocation7 + $0xf4] ss:$8 sps:$4 sm:$0xff]  }
  0x6d   :  { %504 = vmatprep.subr.bf16.mxu1 %v1268_v36  ;;  %987 = vmatpush1.bf16.msra.mxu0 %v1354_v6  ;;  %v1372_v36 = vld [vmem:[#allocation7 + $0x104] ss:$8 sps:$4 sm:$0xff]   ;;  %v1391_v6 = vld [vmem:[#allocation7 + $0x170] ss:$8 sps:$4 sm:$0xff]  }
  0x6e   :  { %988 = vmatprep.subr.bf16.mxu0 %v1355_v7  ;;  %v1396_v7 = vld [vmem:[#allocation7 + $0x184] ss:$8 sps:$4 sm:$0xff]  }
  0x70   :  { %505 = vmatpush1.bf16.msra.mxu1 %v1270_v38  ;;  %v1583_v38 = vshrl.u32 %v136_v37, 7 }
  0x71   :  { %506 = vmatprep.subr.bf16.mxu1 %v1271_v40  ;;  %989 = vmatpush1.bf16.msra.mxu0 %v1357_v10  ;;  %v1591_v40 = vld [vmem:[%s1622_s2] sm:$0xf] }
  0x72   :  { %990 = vmatprep.subr.bf16.mxu0 %v1358_v11  ;;  %v1586_v39 = vsub.s32 0, %v1583_v38  ;;  %v1594_v41 = vsub.s32 1, %v1583_v38  ;;  %v1397_v10 = vld [vmem:[#allocation7 + $0x190] ss:$8 sps:$4 sm:$0xff]   ;;  %v1402_v11 = vld [vmem:[#allocation7 + $0x1a4] ss:$8 sps:$4 sm:$0xff]  }
  0x74   :  { %507 = vmatpush1.bf16.msra.mxu1 %v1273_v42  ;;  %v139_v42 = vrot.slane %v1591_v40, %v1586_v39  ;;  %v143_v43 = vrot.slane %v1591_v40, %v1594_v41 }
  0x75   :  { %517 = vmatprep.subr.bf16.mxu1 %v1276_v45 }
  0x77   :  { %509 = vmatmul.mubr.bf16.vlgmr.msra.gmra.mrb[0].mxu1 %v1578_v48 }
  0x78   :  { %518 = vmatpush1.bf16.msra.mxu1 %v1274_v47  ;;  %549 = vmatprep.mubr.bf16.mxu1 %v1575_v14  ;;  %v1360_v14 = vld [vmem:[#allocation7 + $0xc0] ss:$8 sps:$4 sm:$0xff]  }
  0x79   :  { %519 = vmatprep.subr.bf16.mxu1 %v1279_v49  ;;  %991 = vmatpush1.bf16.msra.mxu0 %v1360_v14  ;;  %v1403_v14 = vld [vmem:[#allocation7 + $0x1b0] ss:$8 sps:$4 sm:$0xff]  }
  0x7a   :  { %992 = vmatprep.subr.bf16.mxu0 %v1361_v15  ;;  %v1408_v15 = vld [vmem:[#allocation7 + $0x1c4] ss:$8 sps:$4 sm:$0xff]  }
  0x7c   :  { %520 = vmatpush1.bf16.msra.mxu1 %v1277_v52 }
  0x7d   :  { %521 = vmatprep.subr.bf16.mxu1 %v1282_v53  ;;  %993 = vmatpush1.bf16.msra.mxu0 %v1363_v31 }
  0x7e   :  { %994 = vmatprep.subr.bf16.mxu0 %v1364_v32 }
  0x80   :  { %522 = vmatpush1.bf16.msra.mxu1 %v1280_v56 }
  0x81   :  { %523 = vmatprep.subr.bf16.mxu1 %v1285_v57  ;;  %995 = vmatpush1.bf16.msra.mxu0 %v1366_v33  ;;  %v1375_v57 = vld [vmem:[#allocation7 + $0x114] ss:$8 sps:$4 sm:$0xff]  }
  0x82   :  { %996 = vmatprep.subr.bf16.mxu0 %v1367_v34  ;;  %v1415_v34 = vld [vmem:[#allocation7 + $0x1f0] ss:$8 sps:$4 sm:$0xff]  }
  0x84   :  { %524 = vmatpush1.bf16.msra.mxu1 %v1283_v60  ;;  %v1376_v60 = vld [vmem:[#allocation7 + $0x120] ss:$8 sps:$4 sm:$0xff]  }
  0x85   :  { %525 = vmatprep.subr.bf16.mxu1 %v1288_v61  ;;  %997 = vmatpush1.bf16.msra.mxu0 %v1369_v35  ;;  %v1381_v61 = vld [vmem:[#allocation7 + $0x134] ss:$8 sps:$4 sm:$0xff]  }
  0x86   :  { %1007 = vmatprep.subr.bf16.mxu0 %v1372_v36 }
  0x88   :  { %526 = vmatpush1.bf16.msra.mxu1 %v1286_v0  ;;  %v1382_v0 = vld [vmem:[#allocation7 + $0x140] ss:$8 sps:$4 sm:$0xff]  }
  0x89   :  { %527 = vmatprep.subr.bf16.mxu1 %v1291_v1  ;;  %v1387_v1 = vld [vmem:[#allocation7 + $0x154] ss:$8 sps:$4 sm:$0xff]  }
  0x8c   :  { %528 = vmatpush1.bf16.msra.mxu1 %v1289_v4  ;;  %v1388_v4 = vld [vmem:[#allocation7 + $0x160] ss:$8 sps:$4 sm:$0xff]  }
  0x8d   :  { %529 = vmatprep.subr.bf16.mxu1 %v1294_v5  ;;  %v1393_v5 = vld [vmem:[#allocation7 + $0x174] ss:$8 sps:$4 sm:$0xff]  }
  0x90   :  { %530 = vmatpush1.bf16.msra.mxu1 %v1292_v8  ;;  %v1394_v8 = vld [vmem:[#allocation7 + $0x180] ss:$8 sps:$4 sm:$0xff]  }
  0x91   :  { %531 = vmatprep.subr.bf16.mxu1 %v1297_v9  ;;  %v1399_v9 = vld [vmem:[#allocation7 + $0x194] ss:$8 sps:$4 sm:$0xff]  }
  0x94   :  { %532 = vmatpush1.bf16.msra.mxu1 %v1295_v12  ;;  %v1400_v12 = vld [vmem:[#allocation7 + $0x1a0] ss:$8 sps:$4 sm:$0xff]  }
  0x95   :  { %533 = vmatprep.subr.bf16.mxu1 %v1300_v13  ;;  %v1405_v13 = vld [vmem:[#allocation7 + $0x1b4] ss:$8 sps:$4 sm:$0xff]  }
  0x98   :  { %534 = vmatpush1.bf16.msra.mxu1 %v1298_v16  ;;  %v1406_v16 = vld [vmem:[#allocation7 + $0x1c0] ss:$8 sps:$4 sm:$0xff]  }
  0x99   :  { %535 = vmatprep.subr.bf16.mxu1 %v1303_v17  ;;  %v1411_v17 = vld [vmem:[#allocation7 + $0x1d4] ss:$8 sps:$4 sm:$0xff]  }
  0x9c   :  { %536 = vmatpush1.bf16.msra.mxu1 %v1301_v18  ;;  %v146_v18 = vsub.s32 2, %v1583_v38 }
  0x9d   :  { %537 = vmatprep.subr.bf16.mxu1 %v1306_v19  ;;  %v150_v19 = vsub.s32 3, %v1583_v38 }
  0xa0   :  { %538 = vmatpush1.bf16.msra.mxu1 %v1304_v20  ;;  %v1409_v20 = vld [vmem:[#allocation7 + $0x1d0] ss:$8 sps:$4 sm:$0xff]  }
  0xa1   :  { %539 = vmatprep.subr.bf16.mxu1 %v1309_v21  ;;  %v147_v21 = vrot.slane %v1591_v40, %v146_v18 }
  0xa4   :  { %540 = vmatpush1.bf16.msra.mxu1 %v1307_v22  ;;  %v1414_v22 = vld [vmem:[#allocation7 + $0x1e4] ss:$8 sps:$4 sm:$0xff]  }
  0xa5   :  { %541 = vmatprep.subr.bf16.mxu1 %v1312_v23  ;;  %v151_v23 = vrot.slane %v1591_v40, %v150_v19  ;;  %v634_v40 = vld [vmem:[%s1624_s4] sm:$0x3] }
  0xa8   :  { %542 = vmatpush1.bf16.msra.mxu1 %v1310_v24 }
  0xa9   :  { %543 = vmatprep.subr.bf16.mxu1 %v1315_v25  ;;  %v1412_v25 = vld [vmem:[#allocation7 + $0x1e0] ss:$8 sps:$4 sm:$0xff]  }
  0xac   :  { %544 = vmatpush1.bf16.msra.mxu1 %v1313_v26 }
  0xad   :  { %545 = vmatprep.subr.bf16.mxu1 %v1318_v27 }
  0xb0   :  { %546 = vmatpush1.bf16.msra.mxu1 %v1316_v28  ;;  %v1417_v28 = vld [vmem:[#allocation7 + $0x1f4] ss:$8 sps:$4 sm:$0xff]  }
  0xb1   :  { %547 = vmatprep.subr.bf16.mxu1 %v1321_v29 }
  0xb4   :  { %548 = vmatpush1.bf16.msra.mxu1 %v1319_v30 }
  0xb7   :  { %550 = vmatmul.mubr.bf16.vlgmr.msra.gmra.mrb[4].mxu1 %v1578_v48 }
 0x14a   :  { %v510_v44 = vpop.f32.mrb[0].mxu1 }
 0x14b   :  { %v511_v45 = vadd.f32 %v510_v44, %v139_v42  ;;  %v512_v46 = vpop.f32.mrb[1].mxu1  ;;  %v639_v42 = vrot.slane %v634_v40, %v1586_v39 }
 0x14c   :  { %v513_v47 = vadd.f32 %v512_v46, %v143_v43  ;;  %v514_v48 = vpop.f32.mrb[2].mxu1  ;;  %v643_v43 = vrot.slane %v634_v40, %v1594_v41 }
 0x14d   :  { %v558_v49 = vmul.f32 0.2, %v511_v45  ;;  %v515_v50 = vpop.f32.mrb[3].mxu1 }
 0x14e   :  { %v559_v51 = vmul.f32 0.2, %v513_v47 }
 0x14f   :  { %v562_v52 = vmax.f32 %v511_v45, %v558_v49  ;;  %v1052_v45 = vld [vmem:[%s1625_s5] sm:$0x3] }
 0x150   :  { %v563_v53 = vmax.f32 %v513_v47, %v559_v51 }
 0x151   :  { %v566_v56 = vpack.c.bf16 %v562_v52, %v562_v52  ;;  %v1057_v52 = vrot.slane %v1052_v45, %v1586_v39 }
 0x152   :  { %v567_v54 = vpack.c.bf16 %v563_v53, %v563_v53 }
 0x154   :  { %998 = vmatprep.mubr.bf16.mxu0 %v567_v54  ;;  %v1061_v54 = vrot.slane %v1052_v45, %v1594_v41 }
 0x155   :  { %999 = vmatmul.mubr.bf16.vlgmr.msra.gmra.mrb[0].mxu0 %v566_v56 }
 0x156   :  { %1008 = vmatpush1.bf16.msra.mxu0 %v1370_v55 }
 0x157   :  { %1009 = vmatprep.subr.bf16.mxu0 %v1375_v57 }
 0x15a   :  { %1010 = vmatpush1.bf16.msra.mxu0 %v1373_v58 }
 0x15b   :  { %1011 = vmatprep.subr.bf16.mxu0 %v1378_v59 }
 0x15e   :  { %1012 = vmatpush1.bf16.msra.mxu0 %v1376_v60  ;;  %v1070_v60 = vstv %s1626_s6 }
 0x15f   :  { %1013 = vmatprep.subr.bf16.mxu0 %v1381_v61 }
 0x162   :  { %1014 = vmatpush1.bf16.msra.mxu0 %v1379_v62 }
 0x163   :  { %1015 = vmatprep.subr.bf16.mxu0 %v1384_v63 }
 0x166   :  { %1016 = vmatpush1.bf16.msra.mxu0 %v1382_v0 }
 0x167   :  { %1017 = vmatprep.subr.bf16.mxu0 %v1387_v1 }
 0x16a   :  { %1018 = vmatpush1.bf16.msra.mxu0 %v1385_v2 }
 0x16b   :  { %1019 = vmatprep.subr.bf16.mxu0 %v1390_v3 }
 0x16e   :  { %1020 = vmatpush1.bf16.msra.mxu0 %v1388_v4 }
 0x16f   :  { %1021 = vmatprep.subr.bf16.mxu0 %v1393_v5 }
 0x172   :  { %1022 = vmatpush1.bf16.msra.mxu0 %v1391_v6 }
 0x173   :  { %1023 = vmatprep.subr.bf16.mxu0 %v1396_v7 }
 0x176   :  { %1024 = vmatpush1.bf16.msra.mxu0 %v1394_v8 }
 0x177   :  { %1025 = vmatprep.subr.bf16.mxu0 %v1399_v9 }
 0x17a   :  { %1026 = vmatpush1.bf16.msra.mxu0 %v1397_v10 }
 0x17b   :  { %1027 = vmatprep.subr.bf16.mxu0 %v1402_v11 }
 0x17e   :  { %1028 = vmatpush1.bf16.msra.mxu0 %v1400_v12 }
 0x17f   :  { %1029 = vmatprep.subr.bf16.mxu0 %v1405_v13 }
 0x182   :  { %1030 = vmatpush1.bf16.msra.mxu0 %v1403_v14 }
 0x183   :  { %1031 = vmatprep.subr.bf16.mxu0 %v1408_v15 }
 0x186   :  { %1032 = vmatpush1.bf16.msra.mxu0 %v1406_v16 }
 0x187   :  { %1033 = vmatprep.subr.bf16.mxu0 %v1411_v17 }
 0x18a   :  { %v551_v24 = vpop.f32.mrb[4].mxu1  ;;  %1034 = vmatpush1.bf16.msra.mxu0 %v1409_v20 }
 0x18b   :  { %v552_v26 = vadd.f32 %v551_v24, %v147_v21  ;;  %v553_v27 = vpop.f32.mrb[5].mxu1  ;;  %1035 = vmatprep.subr.bf16.mxu0 %v1414_v22 }
 0x18c   :  { %v554_v29 = vadd.f32 %v553_v27, %v151_v23  ;;  %v555_v30 = vpop.f32.mrb[6].mxu1 }
 0x18d   :  { %v560_v31 = vmul.f32 0.2, %v552_v26  ;;  %v556_v32 = vpop.f32.mrb[7].mxu1 }
 0x18e   :  { %v561_v33 = vmul.f32 0.2, %v554_v29  ;;  %1036 = vmatpush1.bf16.msra.mxu0 %v1412_v25 }
 0x18f   :  { %v564_v35 = vmax.f32 %v552_v26, %v560_v31  ;;  %1037 = vmatprep.subr.bf16.mxu0 %v1417_v28 }
 0x190   :  { %v565_v36 = vmax.f32 %v554_v29, %v561_v33 }
 0x191   :  { %v568_v38 = vpack.c.bf16 %v564_v35, %v564_v35 }
 0x192   :  { %v569_v37 = vpack.c.bf16 %v565_v36, %v565_v36  ;;  %1038 = vmatpush1.bf16.msra.mxu0 %v1415_v34 }
 0x194   :  { %1039 = vmatprep.mubr.bf16.mxu0 %v569_v37 }
 0x195   :  { %1040 = vmatmul.mubr.bf16.vlgmr.msra.gmra.mrb[0].mxu0 %v568_v38 }
 0x268   :  { %v1041_v44 = vpop.f32.mrb[0].mxu0 }
 0x269   :  { %v1213_v46 = vadd.f32 %v1041_v44, %v639_v42  ;;  %v1043_v47 = vpop.f32.mrb[1].mxu0 }
 0x26a   :  { %v1214_v48 = vadd.f32 %v1043_v47, %v643_v43  ;;  %v1045_v49 = vpop.f32.mrb[2].mxu0 }
 0x26b   :  { %v1048_v50 = vmul.f32 0.2, %v1213_v46  ;;  %v1046_v51 = vpop.f32.mrb[3].mxu0 }
 0x26c   :  { %v1049_v53 = vmul.f32 0.2, %v1214_v48 }
 0x26d   :  { %v1050_v55 = vmax.f32 %v1213_v46, %v1048_v50 }
 0x26e   :  { %v1051_v56 = vmax.f32 %v1214_v48, %v1049_v53 }
 0x26f   :  { %v1064_v57 = vmul.f32 %v1057_v52, %v1050_v55 }
 0x270   :  { %v1065_v58 = vmul.f32 %v1061_v54, %v1051_v56 }
 0x272   :  { %v1066_v59 = vadd.f32 %v1065_v58, %v1064_v57 }
 0x274   :  { %1067 = vadd.xlane.f32.xlu0 %v1066_v59 }
 0x301   :  { %v1068_v61 = vpop.xlane.xlu0 %1067 }
 0x302   :  { %v1071_v62 = vadd.f32 %v1070_v60, %v1068_v61 }
 0x304   :  { %v1072_v63 = vsub.f32 0.0, %v1071_v62 }
 0x306   :  { %v1073_v0 = vmul.f32 1.442695, %v1072_v63 }
 0x308   :  { %1418 = vpow2.f32 %v1073_v0 }
 0x312   :  { %v1419_v1 = vpop.eup %1418 }
 0x313   :  { %v1075_v39 = vadd.f32 1.0, %v1419_v1 }
 0x315   :  { %1420 = vrcp.f32 %v1075_v39 }
 0x31f   :  { %v1421_v41 = vpop.eup %1420 }
 0x320   :  { %1078 = vst.msk [vmem:[%s1627_s7] sm:$0xff] %vm1077_vm0, %v1421_v41 }
 0x321   :  { %1083 = vsyncpa [#allocation4], 1 }
 0x322   :  { %1084 = vsyncpa [#allocation6], 1 }

</bundles_post_ra>
